<compile_context>
chip_gen: v7x
topology: tpu7x:2x2x1
jax: 0.10.0
libtpu: 0.0.40
codegen_flags: <defaults>
</compile_context>

<pallas_src>
import functools

import jax
import jax.numpy as jnp
from jax.experimental import pallas as pl
from jax.experimental.pallas import tpu as pltpu

EPS = 1e-5  # F.layer_norm default


def _round_up(x, m):
    return (x + m - 1) // m * m


def _layernorm_kernel(x_ref, gamma_ref, beta_ref, o_ref, *, dim, mask_lanes):
    # x_ref: (tm, dim) tile of independent rows.
    x = x_ref[...].astype(jnp.float32)
    inv_d = 1.0 / float(dim)

    if mask_lanes:
        # dim is not a 128-multiple: mask any physically padded lanes out of
        # BOTH reductions (mean and variance).
        lane = jax.lax.broadcasted_iota(jnp.int32, x.shape, dimension=1)
        valid = lane < dim
        x_sum_src = jnp.where(valid, x, 0.0)
    else:
        valid = None
        x_sum_src = x

    mean = jnp.sum(x_sum_src, axis=-1, keepdims=True) * inv_d
    xc = x - mean
    xc2 = xc * xc
    if mask_lanes:
        xc2 = jnp.where(valid, xc2, 0.0)
    var = jnp.sum(xc2, axis=-1, keepdims=True) * inv_d  # biased, torch semantics

    inv = jax.lax.rsqrt(var + EPS)
    y = xc * inv
    o_ref[...] = (y * gamma_ref[...] + beta_ref[...]).astype(o_ref.dtype)


def layer_norm_pallas(x, gamma, beta):
    """x: (..., dim); gamma/beta: (dim,). Returns same shape/dtype as x."""
    orig_shape = x.shape
    dim = orig_shape[-1]
    rows = 1
    for s in orig_shape[:-1]:
        rows *= s

    x2 = x.reshape(rows, dim)                          # free reshape (no copy)
    gamma2 = gamma.astype(jnp.float32).reshape(1, dim)
    beta2 = beta.astype(jnp.float32).reshape(1, dim)

    # ---- generation-aware row-tile selection ----
    try:
        vmem_cap = int(getattr(pltpu.get_tpu_info(), "vmem_capacity_bytes"))
    except Exception:  # interpret mode / non-TPU fallback: assume smallest (v7x)
        vmem_cap = 64 << 20

    # sublane multiple for the input dtype (8 for f32, 16 for bf16, 32 for int8)
    sub = {4: 8, 2: 16, 1: 32}.get(jnp.dtype(x.dtype).itemsize, 8)

    # ~2 MiB (v7x) .. ~4 MiB (v5e/v6e) f32-equivalent input per tile: already at
    # HBM roofline per measured data, leaves VMEM headroom for Mosaic temps.
    target_bytes = min(4 << 20, max(1 << 20, vmem_cap // 32))
    tm = max(sub, (target_bytes // (dim * 4)) // sub * sub)
    # keep >= ~8 grid steps when there is enough work (megacore + pipelining)
    tm = min(tm, max(sub, _round_up(pl.cdiv(rows, 8), sub)))

    if tm >= rows:
        # Single block covering all rows (block dim == full array dim: always legal).
        tm = rows
        num_steps = 1
    else:
        # tm is a multiple of `sub`; ragged last block is masked by Pallas on write.
        num_steps = pl.cdiv(rows, tm)

    # ---- explicit VMEM budget with 25% slack (ceiling, not an allocation) ----
    bytes_in = jnp.dtype(x2.dtype).itemsize
    bytes_out = jnp.dtype(x.dtype).itemsize
    need = (2 * tm * dim * (bytes_in + bytes_out)      # double-buffered in + out
            + 2 * 2 * dim * 4                          # gamma/beta
            + 4 * tm * dim * 4)                        # f32 temporaries
    vmem_limit = int(min(vmem_cap * 3 // 4, max(32 << 20, need * 5 // 4)))

    kernel = functools.partial(
        _layernorm_kernel, dim=dim, mask_lanes=(dim % 128 != 0))

    out = pl.pallas_call(
        kernel,
        out_shape=jax.ShapeDtypeStruct((rows, dim), x.dtype),
        grid_spec=pltpu.PrefetchScalarGridSpec(
            num_scalar_prefetch=0,
            grid=(num_steps,),
            in_specs=[
                pl.BlockSpec((tm, dim), lambda i: (i, 0)),
                pl.BlockSpec((1, dim), lambda i: (0, 0)),   # resident across steps
                pl.BlockSpec((1, dim), lambda i: (0, 0)),   # resident across steps
            ],
            out_specs=pl.BlockSpec((tm, dim), lambda i: (i, 0)),
        ),
        compiler_params=pltpu.CompilerParams(
            dimension_semantics=("parallel",),
            vmem_limit_bytes=vmem_limit,
        ),
    )(x2, gamma2, beta2)

    return out.reshape(orig_shape)


if __name__ == "__main__":
    key = jax.random.PRNGKey(0)
    batch, seq, dim = 2, 8, 32
    x = jax.random.normal(key, (batch, seq, dim), dtype=jnp.float32)

    # Deterministic parameter init matching the module's __init__:
    gamma = jnp.ones((dim,), dtype=jnp.float32)   # nn.Parameter(torch.ones(dim))
    beta = jnp.zeros((dim,), dtype=jnp.float32)   # registered zero buffer

    out = layer_norm_pallas(x, gamma, beta)
    out = jax.block_until_ready(out)

    # Reference check against plain-JAX layer norm (torch F.layer_norm semantics).
    mean = jnp.mean(x, axis=-1, keepdims=True)
    var = jnp.mean((x - mean) ** 2, axis=-1, keepdims=True)
    ref = (x - mean) / jnp.sqrt(var + EPS) * gamma + beta
    assert out.shape == x.shape and out.dtype == x.dtype
    assert jnp.allclose(out, ref, atol=1e-5, rtol=1e-5), "mismatch vs reference"

    print("KERNEL_OK")
</pallas_src>

<mosaic_0001>
module attributes {stable_mosaic.version = 11 : i64} {
  func.func @_layernorm_kernel(%arg0: i32, %arg1: memref<8x32xf32, #tpu.memory_space<vmem>>, %arg2: memref<1x32xf32, #tpu.memory_space<vmem>>, %arg3: memref<1x32xf32, #tpu.memory_space<vmem>>, %arg4: memref<8x32xf32, #tpu.memory_space<vmem>>) attributes {dimension_semantics = [#tpu.dimension_semantics<parallel>], iteration_bounds = array<i64: 2>, scalar_prefetch = 0 : i64, scratch_operands = 0 : i64, tpu.core_type = #tpu.core_type<tc>, window_params = [{transform_indices = @transform_0, window_bounds = array<i64: 8, 32>}, {pipeline_mode = #tpu.pipeline_mode<synchronous>, transform_indices = @transform_1, window_bounds = array<i64: 1, 32>}, {pipeline_mode = #tpu.pipeline_mode<synchronous>, transform_indices = @transform_2, window_bounds = array<i64: 1, 32>}, {transform_indices = @transform_3, window_bounds = array<i64: 8, 32>}]} {
    %c0 = arith.constant 0 : index
    %c0_0 = arith.constant 0 : index
    %0 = vector.load %arg1[%c0, %c0_0] : memref<8x32xf32, #tpu.memory_space<vmem>>, vector<8x32xf32>
    %1 = tpu.iota {dimensions = array<i32: 1>} : vector<8x32xi32>
    %c32_i32 = arith.constant 32 : i32
    %2 = vector.broadcast %c32_i32 : i32 to vector<8x32xi32>
    %3 = arith.cmpi slt, %1, %2 : vector<8x32xi32>
    %cst = arith.constant 0.000000e+00 : f32
    %4 = vector.broadcast %cst : f32 to vector<8x32xf32>
    %5 = arith.select %3, %0, %4 : vector<8x32xi1>, vector<8x32xf32>
    %cst_1 = arith.constant dense<0.000000e+00> : vector<8xf32>
    %6 = vector.multi_reduction <add>, %5, %cst_1 [1] : vector<8x32xf32> to vector<8xf32>
    %7 = vector.shape_cast %6 : vector<8xf32> to vector<8x1xf32>
    %cst_2 = arith.constant 3.125000e-02 : f32
    %8 = vector.broadcast %cst_2 : f32 to vector<8x1xf32>
    %9 = arith.mulf %7, %8 : vector<8x1xf32>
    %10 = vector.broadcast %9 : vector<8x1xf32> to vector<8x32xf32>
    %11 = arith.subf %0, %10 : vector<8x32xf32>
    %12 = arith.mulf %11, %11 : vector<8x32xf32>
    %cst_3 = arith.constant 0.000000e+00 : f32
    %13 = vector.broadcast %cst_3 : f32 to vector<8x32xf32>
    %14 = arith.select %3, %12, %13 : vector<8x32xi1>, vector<8x32xf32>
    %cst_4 = arith.constant dense<0.000000e+00> : vector<8xf32>
    %15 = vector.multi_reduction <add>, %14, %cst_4 [1] : vector<8x32xf32> to vector<8xf32>
    %16 = vector.shape_cast %15 : vector<8xf32> to vector<8x1xf32>
    %cst_5 = arith.constant 3.125000e-02 : f32
    %17 = vector.broadcast %cst_5 : f32 to vector<8x1xf32>
    %18 = arith.mulf %16, %17 : vector<8x1xf32>
    %cst_6 = arith.constant 9.99999974E-6 : f32
    %19 = vector.broadcast %cst_6 : f32 to vector<8x1xf32>
    %20 = arith.addf %18, %19 : vector<8x1xf32>
    %21 = math.rsqrt %20 : vector<8x1xf32>
    %22 = vector.broadcast %21 : vector<8x1xf32> to vector<8x32xf32>
    %23 = arith.mulf %11, %22 : vector<8x32xf32>
    %c0_7 = arith.constant 0 : index
    %c0_8 = arith.constant 0 : index
    %24 = vector.load %arg2[%c0_7, %c0_8] : memref<1x32xf32, #tpu.memory_space<vmem>>, vector<1x32xf32>
    %25 = vector.broadcast %24 : vector<1x32xf32> to vector<8x32xf32>
    %26 = arith.mulf %23, %25 : vector<8x32xf32>
    %c0_9 = arith.constant 0 : index
    %c0_10 = arith.constant 0 : index
    %27 = vector.load %arg3[%c0_9, %c0_10] : memref<1x32xf32, #tpu.memory_space<vmem>>, vector<1x32xf32>
    %28 = vector.broadcast %27 : vector<1x32xf32> to vector<8x32xf32>
    %29 = arith.addf %26, %28 : vector<8x32xf32>
    %c0_11 = arith.constant 0 : index
    %c0_12 = arith.constant 0 : index
    %30 = vector.load %arg4[%c0_11, %c0_12] : memref<8x32xf32, #tpu.memory_space<vmem>>, vector<8x32xf32>
    tpu.vector_store %arg4[%c0_11, %c0_12], %29 {strides = array<i32>} : memref<8x32xf32, #tpu.memory_space<vmem>>, vector<8x32xf32>,
    return
  }
  func.func @transform_0(%arg0: i32) -> (i32, i32) {
    %c0_i32 = arith.constant 0 : i32
    %c0_i32_0 = arith.constant 0 : i32
    return %arg0, %c0_i32 : i32, i32
  }
  func.func @transform_1(%arg0: i32) -> (i32, i32) {
    %c0_i32 = arith.constant 0 : i32
    %c0_i32_0 = arith.constant 0 : i32
    %c0_i32_1 = arith.constant 0 : i32
    return %c0_i32, %c0_i32_0 : i32, i32
  }
  func.func @transform_2(%arg0: i32) -> (i32, i32) {
    %c0_i32 = arith.constant 0 : i32
    %c0_i32_0 = arith.constant 0 : i32
    %c0_i32_1 = arith.constant 0 : i32
    return %c0_i32, %c0_i32_0 : i32, i32
  }
  func.func @transform_3(%arg0: i32) -> (i32, i32) {
    %c0_i32 = arith.constant 0 : i32
    %c0_i32_0 = arith.constant 0 : i32
    return %arg0, %c0_i32 : i32, i32
  }
}

</mosaic_0001>

<bundles_post_ra>
// kernel: tpu_custom_call.1
= control target key start
LH: loop header
LB: loop body
LE: loop exit
PB: predicated region body
PF: predicated region fallthrough
CT: control target
= control target key end

     0   :  { %8 = vsyncpa [#allocation3], 0  ;;  %s659_s0 = inlined_call_operand.hbm [shape: f32[16,32], index: 0, kind: input, shape index: {}]   ;;  %s660_s1 = inlined_call_operand.vmem [shape: f32[1,32], index: 1, kind: input, shape index: {}]   ;;  %s661_s2 = inlined_call_operand.vmem [shape: f32[1,32], index: 2, kind: input, shape index: {}]   ;;  %s662_s3 = inlined_call_operand.hbm [shape: f32[16,32], index: 3, kind: output, shape index: {}]  }
   0x1   :  { %10 = vsyncpa [#allocation3 + $0x1], 0 }
   0x2   :  { %11 = vsyncpa [#allocation4], 0 }
   0x3   :  { %13 = vsyncpa [#allocation4 + $0x1], 0  ;;  %s489_s12 = smov 0   ;;  %s491_s13 = smov 0  }
   0x4   :  { %s493_s14 = smov 0   ;;  %s495_s15 = smov 0  }
   0x5 LB: > { %s510_s16 = sadd.s32 4294967295, %s465_s15   ;;  %s307_s17 = sadd.s32 4294967294, %s465_s15   ;;  %s465_s15 = sphi %s495_s15, %s677_s15   ;;  %s461_s14 = sphi %s493_s14, %s676_s14   ;;  %s457_s13 = sphi %s491_s13, %s675_s13   ;;  %s453_s12 = sphi %s489_s12, %s674_s12  }
   0x6   : > { %s514_s18 = sadd.s32 1, %s465_s15   ;;  %s26_s19 = sadd.s32 1, %s461_s14 }
   0x7   : > { %s23_s20 = ssub.s32 %s465_s15, %s514_s18  ;;  %p33_p0 = scmp.ne.s32.totalorder %s461_s14, %s457_s13 }
   0x8   : > { %p24_p1 = scmp.eq.s32.totalorder %s23_s20, 0  ;;  %p34_p2 = scmp.eq.s32.totalorder %s465_s15, 0 }
   0x9   : > { %p39_p3 = scmp.ne.s32.totalorder %s457_s13, %s453_s12  ;;  %p40_p4 = scmp.eq.s32.totalorder %s510_s16, 0 }
   0xa   : > { %s526_s21 = scalar_select %p24_p1, %s461_s14, %s26_s19  }
   0xb   : > { %p528_p5 = por %p34_p2, %p33_p0  ;;  %p532_p6 = por %p40_p4, %p39_p3 }
   0xc   : > { %p105_p7 = scmp.eq.s32.totalorder %s510_s16, 1  ;;  %p111_p8 = scmp.eq.s32.totalorder %s307_s17, 1 }
   0xd   : > { %p333_p10 = scmp.lt.s32.totalorder %s465_s15, 2  ;;  %s137_s26 = sand.u32 1, %s461_s14  }
   0xe   : > { %p539_p11 = por %p105_p7, %p33_p0  ;;  %p543_p12 = por %p111_p8, %p39_p3 }
   0xf   : > { %s311_s27 = sshll.u32 %s465_s15, 7  ;;  %s310_s28 = sshll.u32 %s137_s26, 3 }
  0x10   : > { %s666_s24 = scalar_select %p539_p11, 1, 0 }
  0x11   : > { %s667_s25 = scalar_select %p543_p12, 1, 0 }
  0x12   : > { %s552_s4 = scalar_lea.hbm %s659_s0, %s311_s27  ;;  %s141_s5 = scalar_lea.vmem [#allocation2], %s310_s28 }
  0x13   : > { %s148_s6 = sshll.u32 %s141_s5, 4  ;;  %p556_p13 = pnand %p333_p10, %p528_p5  ;;  %s560_s6 = int_to_ptr.vmem [resolvable:$true] %s148_s6 }
  0x14   : > { %s138_s8 = scalar_lea.sflag [#allocation3], %s137_s26  ;;  %s369_s9 = scalar_lea.hbm %s552_s4, 128 }
  0x15   : > { %p370_p2 = scmp.ne.s32.totalorder %s552_s4, %s369_s9  ;;  %p371_p3 = pneg %p556_p13 }
  0x16   : > { %s374_s17 = scalar_lea.hbm %s659_s0, 256  ;;  %p375_p5 = scmp.lt.u32.totalorder %s552_s4, %s659_s0 }
  0x17   : > { %p372_p4 = pnand %p371_p3, %p370_p2  ;;  %p376_p8 = scmp.lt.u32.totalorder %s374_s17, %s369_s9 }
  0x18   : > { %p378_p9 = scmp.lt.u32.totalorder %s369_s9, %s552_s4 }
  0x19   : > { %p373_p7 = pneg %p372_p4  ;;  %p377_p10 = por %p376_p8, %p375_p5 }
  0x1b   : > { %p379_p0 = por %p378_p9, %p377_p10 }
  0x1d   : > { %p380_p1 = pnand %p379_p0, %p373_p7 }
  0x1f   : > { %383 = shalt.err (!%p380_p1)
}
  0x20   : > { %s384_s22 = scalar_lea.vmem %s560_s6, 128  ;;  %s467_s26 = smov [#allocation2]  }
  0x21   : > { %p385_p2 = scmp.ne.s32.totalorder %s560_s6, %s384_s22  ;;  %s389_s27 = sshll.u32 %s467_s26, 4  ;;  %s390_s27 = int_to_ptr.vmem [resolvable:$false] %s389_s27 }
  0x22   : > { %s391_s28 = scalar_lea.vmem %s390_s27, 256  ;;  %p392_p11 = scmp.lt.s32.totalorder %s560_s6, %s390_s27 }
  0x23   : > { %p387_p4 = pnand %p385_p2, %p371_p3  ;;  %p393_p5 = scmp.lt.s32.totalorder %s391_s28, %s384_s22 }
  0x25   : > { %p388_p12 = pneg %p387_p4  ;;  %p394_p8 = por %p393_p5, %p392_p11 }
  0x27   : > { %p395_p9 = pnand %p394_p8, %p388_p12 }
  0x29   : > { %398 = shalt.err (!%p395_p9)
}
  0x2a   : > { %328 = dma.hbm_to_vmem [thread:$0]  (!%p556_p13), %s552_s4, 128, %s560_s6, %s138_s8  }
  0x2b   : > { %p669_p0 = scmp.lt.s32.totalorder %s465_s15, 3  ;;  %p670_p1 = scmp.ge.s32.totalorder %s465_s15, 1 }
  0x2d   : > { %p154_p3 = pnand %p670_p1, %p669_p0 }
  0x2e   : > { %s594_s29 = sand.u32 (!%p154_p3), 1, %s457_s13  }
  0x2f   : > { %157 = sbr.rel (%p154_p3) target bundleno = 389 (0x185), region = 32  ;;  %s313_s30 = sshll.u32 (!%p154_p3), %s594_s29, 3 }
  0x30   : > { %s160_s5 = scalar_lea.sflag (!%p154_p3), [#allocation3], %s594_s29  ;;  %s163_s9 = scalar_lea.vmem (!%p154_p3), [#allocation2], %s313_s30 }
  0x36   : > { %444 = dma.done.wait (%p532_p6), %s160_s5, 128  }
  0x37   : > { %446 = vsyncadd (%p532_p6), %s160_s5, 4294967168  ;;  %v187_v0 = vlaneseq  ;;  %vm191_vm1 = vcmask 261120   ;;  %v186_v2 = vld [vmem:[%s163_s9] sm:$0xff]  ;;  %s318_s8 = sshll.u32 %s510_s16, 7  ;;  %s185_s10 = scalar_lea.vmem [#allocation5], %s313_s30 }
  0x38   : > { %v315_v15 = vld [vmem:[%s660_s1] ss:$0 sm:$0xff]  ;;  %s237_s11 = sshll.u32 %s185_s10, 4  ;;  %s614_s20 = scalar_lea.hbm %s662_s3, %s318_s8  ;;  %s616_s11 = int_to_ptr.vmem [resolvable:$true] %s237_s11 }
  0x39   : > { %v188_v1 = vand.u32 127, %v187_v0  ;;  %v316_v17 = vld [vmem:[%s661_s2] ss:$0 sm:$0xff]  ;;  %s224_s22 = scalar_lea.sflag [#allocation4], %s594_s29  ;;  %s399_s26 = scalar_lea.vmem %s616_s11, 128 }
  0x3a   : > { %p400_p6 = scmp.ne.s32.totalorder %s616_s11, %s399_s26  ;;  %p671_p11 = scmp.ne.s32.totalorder %s666_s24, 0 }
  0x3b   : > { %vm189_vm0 = vcmp.lt.s32.totalorder %v188_v1, 32  ;;  %s468_s16 = smov [#allocation5]  }
  0x3c   : > { %v190_v3 = vsel %vm189_vm0, %v186_v2, 0.0  ;;  %p401_p12 = pnand %p400_p6, %p671_p11  ;;  %s403_s27 = sshll.u32 %s468_s16, 4  ;;  %s404_s27 = int_to_ptr.vmem [resolvable:$false] %s403_s27 }
  0x3d   : > { %v192_v4 = vsel %vm191_vm1, %v190_v3, 0.0  ;;  %s405_s28 = scalar_lea.vmem %s404_s27, 256  ;;  %p406_p7 = scmp.lt.s32.totalorder %s616_s11, %s404_s27 }
  0x3e   : > { %193 = vadd.xlane.f32.xlu0 %v192_v4  ;;  %p402_p13 = pneg %p401_p12  ;;  %p407_p10 = scmp.lt.s32.totalorder %s405_s28, %s399_s26 }
  0x40   : > { %p408_p2 = por %p407_p10, %p406_p7 }
  0x42   : > { %p409_p4 = pnand %p408_p2, %p402_p13 }
  0xcb   : > { %v194_v5 = vpop.xlane.xlu0 %193 }
  0xcc   : > { %v195_v6 = vmul.f32 0.03125, %v194_v5 }
  0xce   : > { %v196_v7 = vsub.f32 %v186_v2, %v195_v6 }
  0xd0   : > { %v197_v8 = vmul.f32 %v196_v7, %v196_v7 }
  0xd2   : > { %v198_v9 = vsel %vm189_vm0, %v197_v8, 0.0 }
  0xd3   : > { %v199_v10 = vsel %vm191_vm1, %v198_v9, 0.0 }
  0xd4   : > { %200 = vadd.xlane.f32.xlu0 %v199_v10 }
 0x161   : > { %v201_v11 = vpop.xlane.xlu0 %200 }
 0x162   : > { %v202_v12 = vmul.f32 0.03125, %v201_v11 }
 0x164   : > { %v203_v13 = vadd.f32 1e-05, %v202_v12 }
 0x166   : > { %367 = vrsqrt.f32 %v203_v13 }
 0x170   : > { %v368_v14 = vpop.eup %367 }
 0x171   : > { %v205_v16 = vmul.f32 %v368_v14, %v196_v7 }
 0x173   : > { %v213_v18 = vmul.f32 %v315_v15, %v205_v16 }
 0x175   : > { %v221_v19 = vadd.f32 %v316_v17, %v213_v18 }
 0x177   : > { %222 = vst.msk [vmem:[%s185_s10] sm:$0xff] %vm191_vm1, %v221_v19 }
 0x178   : > { %412 = shalt.err (!%p409_p4)
}
 0x179   : > { %s413_s29 = scalar_lea.hbm %s614_s20, 128  ;;  %s417_s9 = scalar_lea.hbm %s662_s3, 256 }
 0x17a   : > { %p414_p5 = scmp.ne.s32.totalorder %s614_s20, %s413_s29  ;;  %p418_p0 = scmp.lt.u32.totalorder %s614_s20, %s662_s3 }
 0x17b   : > { %p419_p1 = scmp.lt.u32.totalorder %s417_s9, %s413_s29  ;;  %p421_p6 = scmp.lt.u32.totalorder %s413_s29, %s614_s20 }
 0x17c   : > { %p415_p8 = pnand %p414_p5, %p671_p11 }
 0x17d   : > { %p420_p3 = por %p419_p1, %p418_p0 }
 0x17e   : > { %p416_p9 = pneg %p415_p8 }
 0x17f   : > { %p422_p12 = por %p421_p6, %p420_p3 }
 0x181   : > { %p423_p13 = pnand %p422_p12, %p416_p9 }
 0x183   : > { %426 = shalt.err (!%p423_p13)
}
 0x184   : > { %323 = dma.vmem_to_hbm [thread:$0]  (%p671_p11), %s616_s11, 128, %s614_s20, %s224_s22  }
 0x185 PF: > { %s249_s6 = sand.u32 1, %s453_s12   ;;  %p672_p7 = scmp.ne.s32.totalorder %s667_s25, 0 }
 0x186   : > { %p673_p10 = scmp.ge.s32.totalorder %s465_s15, 2  ;;  %s250_s7 = scalar_lea.sflag [#allocation4], %s249_s6 }
 0x188   : > { %p330_p2 = pnand %p673_p10, %p672_p7 }
 0x18a   : > { %448 = dma.done.wait (!%p330_p2), %s250_s7, 128  }
 0x18b   : > { %450 = vsyncadd (!%p330_p2), %s250_s7, 4294967168  ;;  %p16_p4 = scmp.ge.s32.totalorder %s514_s18, 4   ;;  %s674_s12 = smov %s457_s13 }
 0x18c   : > { %s675_s13 = smov %s461_s14  ;;  %s676_s14 = smov %s526_s21 }
 0x18d   : > { %s677_s15 = smov %s514_s18  ;;  %18 = sbr.rel (!%p16_p4) target bundleno = 5 (0x5), region = 77 }
 0x194   :  { %255 = vsyncpa [#allocation3], 1 }
 0x195   :  { %257 = vsyncpa [#allocation3 + $0x1], 1 }
 0x196   :  { %258 = vsyncpa [#allocation4], 1 }
 0x197   :  { %260 = vsyncpa [#allocation4 + $0x1], 1 }

</bundles_post_ra>
